<compile_context>
chip_gen: v5e
topology: v5e:2x2
jax: 0.10.0
libtpu: 0.0.40
codegen_flags: <defaults>
</compile_context>

<pallas_src>
import functools

import jax
import jax.numpy as jnp
from jax.experimental import pallas as pl
from jax.experimental.pallas import tpu as pltpu


def _dice_partials_kernel(logits_ref, target_ref, part_ref, *,
                          num_classes, r_blk, acc_rows, r_total,
                          steps_per_split, needs_mask):
    """Accumulate per-class (inter, |target==c|, |pred==c|) partial-sum slabs.

    logits_ref: (1, C, r_blk, 128)            native float dtype
    target_ref: (1, r_blk, 128)               native int dtype
    part_ref  : (1, 3*(C-1), acc_rows, 128)   int32, VMEM-resident across the
                reduction (row-block) axis; acts as the accumulator.
    """
    C = num_classes
    g = r_blk // acc_rows
    s_idx = pl.program_id(0)
    n_idx = pl.program_id(2)

    @pl.when(n_idx == 0)
    def _init():
        part_ref[...] = jnp.zeros_like(part_ref)

    # Running-max argmax over channels.  Strict '>' means the first maximal index
    # wins ties, matching torch.max/argmax (and all-zero padding resolves to 0).
    maxv = logits_ref[0, 0]                               # (r_blk, 128)
    pred = jnp.zeros((r_blk, 128), jnp.int32)
    for c in range(1, C):
        x = logits_ref[0, c]
        gt = x > maxv
        maxv = jnp.where(gt, x, maxv)
        pred = jnp.where(gt, c, pred)

    tgt = target_ref[0].astype(jnp.int32)                 # (r_blk, 128)

    if needs_mask:
        # Rows at/beyond r_total (partial last block or phantom blocks of the
        # split axis) hold unspecified data: force them to class 0 so classes
        # 1..C-1 never see them.
        row0 = (s_idx * steps_per_split + n_idx) * r_blk
        rows = row0 + jax.lax.broadcasted_iota(jnp.int32, (r_blk, 128), 0)
        valid = rows < r_total
        pred = jnp.where(valid, pred, 0)
        tgt = jnp.where(valid, tgt, 0)

    one = jnp.int32(1)
    zero = jnp.int32(0)

    def fold(ind):
        # (r_blk, 128) -> (acc_rows, 128) partial sums with pure VALU adds.
        # Splitting the sublane axis by acc_rows (=8 in the tiled case) is
        # tile-preserving, so the reshape is free.
        if g == 1:
            return ind
        return jnp.sum(ind.reshape(g, acc_rows, 128), axis=0)

    for c in range(1, C):
        j = c - 1
        tc = tgt == c
        pc = pred == c
        t_i = jnp.where(tc, one, zero)
        p_i = jnp.where(pc, one, zero)
        i_i = jnp.where(pc, t_i, zero)                    # tc & pc
        part_ref[0, j] += fold(i_i)
        part_ref[0, (C - 1) + j] += fold(t_i)
        part_ref[0, 2 * (C - 1) + j] += fold(p_i)


def _vmem_limit_bytes():
    cap = 64 * 1024 * 1024
    try:
        cap = int(pltpu.get_tpu_info().vmem_capacity_bytes)
    except Exception:
        pass
    # Explicit scoped-VMEM limit: half of physical (v5e/v6e: 64 MiB, v7x: 32 MiB).
    return max(32 * 1024 * 1024, cap // 2)


def _choose_rows(r_total, C, logit_bytes, tgt_bytes, vmem_limit, want_two_blocks):
    """Rows-of-128 per block, sized so double-buffered inputs plus ~8 live f32
    temporaries stay within half of the explicit VMEM limit."""
    per_row = 128 * (2 * C * logit_bytes + 2 * tgt_bytes + 8 * 4)
    r_max = max(32, ((vmem_limit // 2) // per_row) // 32 * 32)
    if want_two_blocks and r_total >= 64:
        # B odd / B==1: cap the block at ~half the rows so the row range can be
        # split across both TensorCores on v7x.
        half = ((r_total + 1) // 2 + 31) // 32 * 32
        r_max = min(r_max, half)
    if r_total <= r_max and (r_total % 8 == 0 or r_total <= 256):
        return r_total                                    # single full-extent block
    return min(r_max, max(32, (r_total // 32) * 32))      # multiple of 32 (f32/bf16/i8 safe)


def dice_loss(logits_nchw, target, eps=1e-8):
    """DiceLoss11.forward equivalent. logits_nchw: (B,C,H,W); target: (B,H,W) int."""
    B, C, H, W = logits_nchw.shape
    if C < 2:
        raise ValueError("DiceLoss11 needs at least 2 channels.")
    N = H * W

    logits = logits_nchw
    if not jnp.issubdtype(logits.dtype, jnp.floating):
        logits = logits.astype(jnp.float32)
    logits = logits.reshape(B, C, N)

    tgt = target.reshape(B, -1)
    if (not jnp.issubdtype(tgt.dtype, jnp.integer)) or tgt.dtype.itemsize > 4:
        tgt = tgt.astype(jnp.int32)        # narrow int dtypes stream as-is

    # Pixel axis as (rows, 128): lane+sublane dense blocks.  Pad only to the
    # 128-lane boundary (<128 pixels); zero logits argmax to class 0 and zero
    # targets, so classes 1..C-1 are unaffected.
    n128 = pl.cdiv(N, 128) * 128
    if n128 != N:
        logits = jnp.pad(logits, ((0, 0), (0, 0), (0, n128 - N)))
        tgt = jnp.pad(tgt, ((0, 0), (0, n128 - N)))
    r_total = n128 // 128
    logits = logits.reshape(B, C, r_total, 128)
    tgt = tgt.reshape(B, r_total, 128)

    lb = jnp.dtype(logits.dtype).itemsize
    tb = jnp.dtype(tgt.dtype).itemsize
    vmem_limit = _vmem_limit_bytes()
    want_split = (B % 2 == 1)
    r_blk = _choose_rows(r_total, C, lb, tb, vmem_limit, want_split)

    n_blocks = pl.cdiv(r_total, r_blk)
    n_split = 2 if (n_blocks >= 2 and want_split) else 1
    steps_per_split = pl.cdiv(n_blocks, n_split)
    needs_mask = (n_split * steps_per_split * r_blk) != r_total
    acc_rows = 8 if r_blk % 8 == 0 else r_blk

    if n_split * steps_per_split > n_blocks:
        def _row_blk(s, n):                 # phantom steps clamp to a real block
            return jnp.minimum(s * steps_per_split + n, n_blocks - 1)
    else:
        def _row_blk(s, n):
            return s * steps_per_split + n

    kernel = functools.partial(
        _dice_partials_kernel,
        num_classes=C, r_blk=r_blk, acc_rows=acc_rows, r_total=r_total,
        steps_per_split=steps_per_split, needs_mask=needs_mask)

    out_elems = n_split * B * 3 * (C - 1) * acc_rows * 128
    cost = pl.CostEstimate(
        flops=12 * (C - 1) * B * n128,
        transcendentals=0,
        bytes_accessed=B * C * n128 * lb + B * n128 * tb + out_elems * 4)

    partials = pl.pallas_call(
        kernel,
        out_shape=jax.ShapeDtypeStruct(
            (n_split * B, 3 * (C - 1), acc_rows, 128), jnp.int32),
        grid_spec=pltpu.PrefetchScalarGridSpec(
            num_scalar_prefetch=0,
            grid=(n_split, B, steps_per_split),
            in_specs=[
                pl.BlockSpec((1, C, r_blk, 128),
                             lambda s, b, n: (b, 0, _row_blk(s, n), 0)),
                pl.BlockSpec((1, r_blk, 128),
                             lambda s, b, n: (b, _row_blk(s, n), 0)),
            ],
            out_specs=pl.BlockSpec((1, 3 * (C - 1), acc_rows, 128),
                                   lambda s, b, n: (s * B + b, 0, 0, 0)),
        ),
        compiler_params=pltpu.CompilerParams(
            dimension_semantics=("parallel", "parallel", "arbitrary"),
            vmem_limit_bytes=vmem_limit),
        cost_estimate=cost,
    )(logits, tgt)

    # Tiny final reduction + dice + mean in plain JAX (exact int32 counts).
    counts = jnp.sum(partials, axis=(2, 3))                       # (S*B, 3*(C-1))
    counts = counts.reshape(n_split, B, 3 * (C - 1)).sum(axis=0)  # (B, 3*(C-1))
    inter = counts[:, :C - 1].astype(jnp.float32)
    cnt_t = counts[:, C - 1:2 * (C - 1)].astype(jnp.float32)
    cnt_p = counts[:, 2 * (C - 1):].astype(jnp.float32)
    dice = (inter + eps) / (cnt_t + cnt_p - inter + eps)
    return 1.0 - jnp.mean(dice)


def _dice_loss_ref(logits_nchw, target, eps=1e-8):
    """Pure-JAX reference mirroring the PyTorch loop semantics."""
    B, C, H, W = logits_nchw.shape
    pred = jnp.argmax(logits_nchw, axis=1).reshape(B, -1)
    tgt = target.reshape(B, -1)
    cols = []
    for c in range(1, C):
        ti = tgt == c
        pi = pred == c
        inter = jnp.sum(jnp.logical_and(ti, pi), axis=1).astype(jnp.float32)
        union = jnp.sum(jnp.logical_or(ti, pi), axis=1).astype(jnp.float32)
        cols.append((inter + eps) / (union + eps))
    dice = jnp.stack(cols, axis=1)
    return 1.0 - jnp.mean(dice)


if __name__ == "__main__":
    key = jax.random.PRNGKey(0)
    k1, k2 = jax.random.split(key)
    B, C, H, W = 2, 4, 16, 16
    logits = jax.random.normal(k1, (B, C, H, W), dtype=jnp.float32)
    target = jax.random.randint(k2, (B, H, W), 0, C, dtype=jnp.int32)

    loss = jax.block_until_ready(dice_loss(logits, target))
    ref = jax.block_until_ready(_dice_loss_ref(logits, target))
    assert jnp.allclose(loss, ref, atol=1e-6, rtol=1e-6), (loss, ref)
    print("KERNEL_OK")
</pallas_src>

<mosaic_0001>
module attributes {stable_mosaic.version = 11 : i64} {
  func.func @_dice_partials_kernel(%arg0: i32, %arg1: i32, %arg2: i32, %arg3: memref<1x4x2x128xf32, #tpu.memory_space<vmem>>, %arg4: memref<1x2x128xi32, #tpu.memory_space<vmem>>, %arg5: memref<1x9x2x128xi32, #tpu.memory_space<vmem>>) attributes {dimension_semantics = [#tpu.dimension_semantics<parallel>, #tpu.dimension_semantics<parallel>, #tpu.dimension_semantics<arbitrary>], iteration_bounds = array<i64: 1, 2, 1>, scalar_prefetch = 0 : i64, scratch_operands = 0 : i64, tpu.core_type = #tpu.core_type<tc>, window_params = [{transform_indices = @transform_0, window_bounds = array<i64: 1, 4, 2, 128>}, {transform_indices = @transform_1, window_bounds = array<i64: 1, 2, 128>}, {transform_indices = @transform_2, window_bounds = array<i64: 1, 9, 2, 128>}]} {
    %c0_i32 = arith.constant 0 : i32
    %0 = arith.cmpi eq, %arg2, %c0_i32 : i32
    %1 = arith.extui %0 : i1 to i32
    %c0_i32_0 = arith.constant 0 : i32
    %2 = arith.cmpi ne, %1, %c0_i32_0 : i32
    scf.if %2 {
      %c0_i32_105 = arith.constant 0 : i32
      %115 = vector.broadcast %c0_i32_105 : i32 to vector<1x9x2x128xi32>
      %c0_106 = arith.constant 0 : index
      %c0_107 = arith.constant 0 : index
      %c0_108 = arith.constant 0 : index
      %c0_109 = arith.constant 0 : index
      %116 = vector.load %arg5[%c0_106, %c0_107, %c0_108, %c0_109] : memref<1x9x2x128xi32, #tpu.memory_space<vmem>>, vector<1x9x2x128xi32>
      tpu.vector_store %arg5[%c0_106, %c0_107, %c0_108, %c0_109], %115 {strides = array<i32>} : memref<1x9x2x128xi32, #tpu.memory_space<vmem>>, vector<1x9x2x128xi32>,
    } else {
    }
    %c0 = arith.constant 0 : index
    %c0_1 = arith.constant 0 : index
    %c0_2 = arith.constant 0 : index
    %c0_3 = arith.constant 0 : index
    %3 = vector.load %arg3[%c0, %c0_1, %c0_2, %c0_3] : memref<1x4x2x128xf32, #tpu.memory_space<vmem>>, vector<1x1x2x128xf32>
    %4 = vector.shape_cast %3 : vector<1x1x2x128xf32> to vector<2x128xf32>
    %c0_i32_4 = arith.constant 0 : i32
    %5 = vector.broadcast %c0_i32_4 : i32 to vector<2x128xi32>
    %c0_5 = arith.constant 0 : index
    %c1 = arith.constant 1 : index
    %c0_6 = arith.constant 0 : index
    %c0_7 = arith.constant 0 : index
    %6 = vector.load %arg3[%c0_5, %c1, %c0_6, %c0_7] : memref<1x4x2x128xf32, #tpu.memory_space<vmem>>, vector<1x1x2x128xf32>
    %7 = vector.shape_cast %6 : vector<1x1x2x128xf32> to vector<2x128xf32>
    %8 = arith.cmpf ogt, %7, %4 : vector<2x128xf32>
    %9 = arith.select %8, %7, %4 : vector<2x128xi1>, vector<2x128xf32>
    %c1_i32 = arith.constant 1 : i32
    %10 = vector.broadcast %c1_i32 : i32 to vector<2x128xi32>
    %11 = arith.select %8, %10, %5 : vector<2x128xi1>, vector<2x128xi32>
    %c0_8 = arith.constant 0 : index
    %c2 = arith.constant 2 : index
    %c0_9 = arith.constant 0 : index
    %c0_10 = arith.constant 0 : index
    %12 = vector.load %arg3[%c0_8, %c2, %c0_9, %c0_10] : memref<1x4x2x128xf32, #tpu.memory_space<vmem>>, vector<1x1x2x128xf32>
    %13 = vector.shape_cast %12 : vector<1x1x2x128xf32> to vector<2x128xf32>
    %14 = arith.cmpf ogt, %13, %9 : vector<2x128xf32>
    %15 = arith.select %14, %13, %9 : vector<2x128xi1>, vector<2x128xf32>
    %c2_i32 = arith.constant 2 : i32
    %16 = vector.broadcast %c2_i32 : i32 to vector<2x128xi32>
    %17 = arith.select %14, %16, %11 : vector<2x128xi1>, vector<2x128xi32>
    %c0_11 = arith.constant 0 : index
    %c3 = arith.constant 3 : index
    %c0_12 = arith.constant 0 : index
    %c0_13 = arith.constant 0 : index
    %18 = vector.load %arg3[%c0_11, %c3, %c0_12, %c0_13] : memref<1x4x2x128xf32, #tpu.memory_space<vmem>>, vector<1x1x2x128xf32>
    %19 = vector.shape_cast %18 : vector<1x1x2x128xf32> to vector<2x128xf32>
    %20 = arith.cmpf ogt, %19, %15 : vector<2x128xf32>
    %c3_i32 = arith.constant 3 : i32
    %21 = vector.broadcast %c3_i32 : i32 to vector<2x128xi32>
    %22 = arith.select %20, %21, %17 : vector<2x128xi1>, vector<2x128xi32>
    %c0_14 = arith.constant 0 : index
    %c0_15 = arith.constant 0 : index
    %c0_16 = arith.constant 0 : index
    %23 = vector.load %arg4[%c0_14, %c0_15, %c0_16] : memref<1x2x128xi32, #tpu.memory_space<vmem>>, vector<1x2x128xi32>
    %24 = vector.shape_cast %23 : vector<1x2x128xi32> to vector<2x128xi32>
    %c1_i32_17 = arith.constant 1 : i32
    %25 = vector.broadcast %c1_i32_17 : i32 to vector<2x128xi32>
    %26 = arith.cmpi eq, %24, %25 : vector<2x128xi32>
    %c1_i32_18 = arith.constant 1 : i32
    %27 = vector.broadcast %c1_i32_18 : i32 to vector<2x128xi32>
    %28 = arith.cmpi eq, %22, %27 : vector<2x128xi32>
    %c1_i32_19 = arith.constant 1 : i32
    %c0_i32_20 = arith.constant 0 : i32
    %29 = vector.broadcast %c1_i32_19 : i32 to vector<2x128xi32>
    %30 = vector.broadcast %c0_i32_20 : i32 to vector<2x128xi32>
    %31 = arith.select %26, %29, %30 : vector<2x128xi1>, vector<2x128xi32>
    %c1_i32_21 = arith.constant 1 : i32
    %c0_i32_22 = arith.constant 0 : i32
    %32 = vector.broadcast %c1_i32_21 : i32 to vector<2x128xi32>
    %33 = vector.broadcast %c0_i32_22 : i32 to vector<2x128xi32>
    %34 = arith.select %28, %32, %33 : vector<2x128xi1>, vector<2x128xi32>
    %c0_i32_23 = arith.constant 0 : i32
    %35 = vector.broadcast %c0_i32_23 : i32 to vector<2x128xi32>
    %36 = arith.select %28, %31, %35 : vector<2x128xi1>, vector<2x128xi32>
    %c0_24 = arith.constant 0 : index
    %c0_25 = arith.constant 0 : index
    %c0_26 = arith.constant 0 : index
    %c0_27 = arith.constant 0 : index
    %37 = vector.load %arg5[%c0_24, %c0_25, %c0_26, %c0_27] : memref<1x9x2x128xi32, #tpu.memory_space<vmem>>, vector<1x1x2x128xi32>
    %38 = vector.shape_cast %37 : vector<1x1x2x128xi32> to vector<2x128xi32>
    %39 = arith.addi %38, %36 : vector<2x128xi32>
    %c0_28 = arith.constant 0 : index
    %c0_29 = arith.constant 0 : index
    %c0_30 = arith.constant 0 : index
    %c0_31 = arith.constant 0 : index
    %40 = vector.load %arg5[%c0_28, %c0_29, %c0_30, %c0_31] : memref<1x9x2x128xi32, #tpu.memory_space<vmem>>, vector<1x1x2x128xi32>
    %41 = vector.shape_cast %40 : vector<1x1x2x128xi32> to vector<2x128xi32>
    %42 = vector.shape_cast %39 : vector<2x128xi32> to vector<1x1x2x128xi32>
    tpu.vector_store %arg5[%c0_28, %c0_29, %c0_30, %c0_31], %42 {strides = array<i32>} : memref<1x9x2x128xi32, #tpu.memory_space<vmem>>, vector<1x1x2x128xi32>,
    %c0_32 = arith.constant 0 : index
    %c3_33 = arith.constant 3 : index
    %c0_34 = arith.constant 0 : index
    %c0_35 = arith.constant 0 : index
    %43 = vector.load %arg5[%c0_32, %c3_33, %c0_34, %c0_35] : memref<1x9x2x128xi32, #tpu.memory_space<vmem>>, vector<1x1x2x128xi32>
    %44 = vector.shape_cast %43 : vector<1x1x2x128xi32> to vector<2x128xi32>
    %45 = arith.addi %44, %31 : vector<2x128xi32>
    %c0_36 = arith.constant 0 : index
    %c3_37 = arith.constant 3 : index
    %c0_38 = arith.constant 0 : index
    %c0_39 = arith.constant 0 : index
    %46 = vector.load %arg5[%c0_36, %c3_37, %c0_38, %c0_39] : memref<1x9x2x128xi32, #tpu.memory_space<vmem>>, vector<1x1x2x128xi32>
    %47 = vector.shape_cast %46 : vector<1x1x2x128xi32> to vector<2x128xi32>
    %48 = vector.shape_cast %45 : vector<2x128xi32> to vector<1x1x2x128xi32>
    tpu.vector_store %arg5[%c0_36, %c3_37, %c0_38, %c0_39], %48 {strides = array<i32>} : memref<1x9x2x128xi32, #tpu.memory_space<vmem>>, vector<1x1x2x128xi32>,
    %c0_40 = arith.constant 0 : index
    %c6 = arith.constant 6 : index
    %c0_41 = arith.constant 0 : index
    %c0_42 = arith.constant 0 : index
    %49 = vector.load %arg5[%c0_40, %c6, %c0_41, %c0_42] : memref<1x9x2x128xi32, #tpu.memory_space<vmem>>, vector<1x1x2x128xi32>
    %50 = vector.shape_cast %49 : vector<1x1x2x128xi32> to vector<2x128xi32>
    %51 = arith.addi %50, %34 : vector<2x128xi32>
    %c0_43 = arith.constant 0 : index
    %c6_44 = arith.constant 6 : index
    %c0_45 = arith.constant 0 : index
    %c0_46 = arith.constant 0 : index
    %52 = vector.load %arg5[%c0_43, %c6_44, %c0_45, %c0_46] : memref<1x9x2x128xi32, #tpu.memory_space<vmem>>, vector<1x1x2x128xi32>
    %53 = vector.shape_cast %52 : vector<1x1x2x128xi32> to vector<2x128xi32>
    %54 = vector.shape_cast %51 : vector<2x128xi32> to vector<1x1x2x128xi32>
    tpu.vector_store %arg5[%c0_43, %c6_44, %c0_45, %c0_46], %54 {strides = array<i32>} : memref<1x9x2x128xi32, #tpu.memory_space<vmem>>, vector<1x1x2x128xi32>,
    %c2_i32_47 = arith.constant 2 : i32
    %55 = vector.broadcast %c2_i32_47 : i32 to vector<2x128xi32>
    %56 = arith.cmpi eq, %24, %55 : vector<2x128xi32>
    %c2_i32_48 = arith.constant 2 : i32
    %57 = vector.broadcast %c2_i32_48 : i32 to vector<2x128xi32>
    %58 = arith.cmpi eq, %22, %57 : vector<2x128xi32>
    %c1_i32_49 = arith.constant 1 : i32
    %c0_i32_50 = arith.constant 0 : i32
    %59 = vector.broadcast %c1_i32_49 : i32 to vector<2x128xi32>
    %60 = vector.broadcast %c0_i32_50 : i32 to vector<2x128xi32>
    %61 = arith.select %56, %59, %60 : vector<2x128xi1>, vector<2x128xi32>
    %c1_i32_51 = arith.constant 1 : i32
    %c0_i32_52 = arith.constant 0 : i32
    %62 = vector.broadcast %c1_i32_51 : i32 to vector<2x128xi32>
    %63 = vector.broadcast %c0_i32_52 : i32 to vector<2x128xi32>
    %64 = arith.select %58, %62, %63 : vector<2x128xi1>, vector<2x128xi32>
    %c0_i32_53 = arith.constant 0 : i32
    %65 = vector.broadcast %c0_i32_53 : i32 to vector<2x128xi32>
    %66 = arith.select %58, %61, %65 : vector<2x128xi1>, vector<2x128xi32>
    %c0_54 = arith.constant 0 : index
    %c1_55 = arith.constant 1 : index
    %c0_56 = arith.constant 0 : index
    %c0_57 = arith.constant 0 : index
    %67 = vector.load %arg5[%c0_54, %c1_55, %c0_56, %c0_57] : memref<1x9x2x128xi32, #tpu.memory_space<vmem>>, vector<1x1x2x128xi32>
    %68 = vector.shape_cast %67 : vector<1x1x2x128xi32> to vector<2x128xi32>
    %69 = arith.addi %68, %66 : vector<2x128xi32>
    %c0_58 = arith.constant 0 : index
    %c1_59 = arith.constant 1 : index
    %c0_60 = arith.constant 0 : index
    %c0_61 = arith.constant 0 : index
    %70 = vector.load %arg5[%c0_58, %c1_59, %c0_60, %c0_61] : memref<1x9x2x128xi32, #tpu.memory_space<vmem>>, vector<1x1x2x128xi32>
    %71 = vector.shape_cast %70 : vector<1x1x2x128xi32> to vector<2x128xi32>
    %72 = vector.shape_cast %69 : vector<2x128xi32> to vector<1x1x2x128xi32>
    tpu.vector_store %arg5[%c0_58, %c1_59, %c0_60, %c0_61], %72 {strides = array<i32>} : memref<1x9x2x128xi32, #tpu.memory_space<vmem>>, vector<1x1x2x128xi32>,
    %c0_62 = arith.constant 0 : index
    %c4 = arith.constant 4 : index
    %c0_63 = arith.constant 0 : index
    %c0_64 = arith.constant 0 : index
    %73 = vector.load %arg5[%c0_62, %c4, %c0_63, %c0_64] : memref<1x9x2x128xi32, #tpu.memory_space<vmem>>, vector<1x1x2x128xi32>
    %74 = vector.shape_cast %73 : vector<1x1x2x128xi32> to vector<2x128xi32>
    %75 = arith.addi %74, %61 : vector<2x128xi32>
    %c0_65 = arith.constant 0 : index
    %c4_66 = arith.constant 4 : index
    %c0_67 = arith.constant 0 : index
    %c0_68 = arith.constant 0 : index
    %76 = vector.load %arg5[%c0_65, %c4_66, %c0_67, %c0_68] : memref<1x9x2x128xi32, #tpu.memory_space<vmem>>, vector<1x1x2x128xi32>
    %77 = vector.shape_cast %76 : vector<1x1x2x128xi32> to vector<2x128xi32>
    %78 = vector.shape_cast %75 : vector<2x128xi32> to vector<1x1x2x128xi32>
    tpu.vector_store %arg5[%c0_65, %c4_66, %c0_67, %c0_68], %78 {strides = array<i32>} : memref<1x9x2x128xi32, #tpu.memory_space<vmem>>, vector<1x1x2x128xi32>,
    %c0_69 = arith.constant 0 : index
    %c7 = arith.constant 7 : index
    %c0_70 = arith.constant 0 : index
    %c0_71 = arith.constant 0 : index
    %79 = vector.load %arg5[%c0_69, %c7, %c0_70, %c0_71] : memref<1x9x2x128xi32, #tpu.memory_space<vmem>>, vector<1x1x2x128xi32>
    %80 = vector.shape_cast %79 : vector<1x1x2x128xi32> to vector<2x128xi32>
    %81 = arith.addi %80, %64 : vector<2x128xi32>
    %c0_72 = arith.constant 0 : index
    %c7_73 = arith.constant 7 : index
    %c0_74 = arith.constant 0 : index
    %c0_75 = arith.constant 0 : index
    %82 = vector.load %arg5[%c0_72, %c7_73, %c0_74, %c0_75] : memref<1x9x2x128xi32, #tpu.memory_space<vmem>>, vector<1x1x2x128xi32>
    %83 = vector.shape_cast %82 : vector<1x1x2x128xi32> to vector<2x128xi32>
    %84 = vector.shape_cast %81 : vector<2x128xi32> to vector<1x1x2x128xi32>
    tpu.vector_store %arg5[%c0_72, %c7_73, %c0_74, %c0_75], %84 {strides = array<i32>} : memref<1x9x2x128xi32, #tpu.memory_space<vmem>>, vector<1x1x2x128xi32>,
    %c3_i32_76 = arith.constant 3 : i32
    %85 = vector.broadcast %c3_i32_76 : i32 to vector<2x128xi32>
    %86 = arith.cmpi eq, %24, %85 : vector<2x128xi32>
    %c3_i32_77 = arith.constant 3 : i32
    %87 = vector.broadcast %c3_i32_77 : i32 to vector<2x128xi32>
    %88 = arith.cmpi eq, %22, %87 : vector<2x128xi32>
    %c1_i32_78 = arith.constant 1 : i32
    %c0_i32_79 = arith.constant 0 : i32
    %89 = vector.broadcast %c1_i32_78 : i32 to vector<2x128xi32>
    %90 = vector.broadcast %c0_i32_79 : i32 to vector<2x128xi32>
    %91 = arith.select %86, %89, %90 : vector<2x128xi1>, vector<2x128xi32>
    %c1_i32_80 = arith.constant 1 : i32
    %c0_i32_81 = arith.constant 0 : i32
    %92 = vector.broadcast %c1_i32_80 : i32 to vector<2x128xi32>
    %93 = vector.broadcast %c0_i32_81 : i32 to vector<2x128xi32>
    %94 = arith.select %88, %92, %93 : vector<2x128xi1>, vector<2x128xi32>
    %c0_i32_82 = arith.constant 0 : i32
    %95 = vector.broadcast %c0_i32_82 : i32 to vector<2x128xi32>
    %96 = arith.select %88, %91, %95 : vector<2x128xi1>, vector<2x128xi32>
    %c0_83 = arith.constant 0 : index
    %c2_84 = arith.constant 2 : index
    %c0_85 = arith.constant 0 : index
    %c0_86 = arith.constant 0 : index
    %97 = vector.load %arg5[%c0_83, %c2_84, %c0_85, %c0_86] : memref<1x9x2x128xi32, #tpu.memory_space<vmem>>, vector<1x1x2x128xi32>
    %98 = vector.shape_cast %97 : vector<1x1x2x128xi32> to vector<2x128xi32>
    %99 = arith.addi %98, %96 : vector<2x128xi32>
    %c0_87 = arith.constant 0 : index
    %c2_88 = arith.constant 2 : index
    %c0_89 = arith.constant 0 : index
    %c0_90 = arith.constant 0 : index
    %100 = vector.load %arg5[%c0_87, %c2_88, %c0_89, %c0_90] : memref<1x9x2x128xi32, #tpu.memory_space<vmem>>, vector<1x1x2x128xi32>
    %101 = vector.shape_cast %100 : vector<1x1x2x128xi32> to vector<2x128xi32>
    %102 = vector.shape_cast %99 : vector<2x128xi32> to vector<1x1x2x128xi32>
    tpu.vector_store %arg5[%c0_87, %c2_88, %c0_89, %c0_90], %102 {strides = array<i32>} : memref<1x9x2x128xi32, #tpu.memory_space<vmem>>, vector<1x1x2x128xi32>,
    %c0_91 = arith.constant 0 : index
    %c5 = arith.constant 5 : index
    %c0_92 = arith.constant 0 : index
    %c0_93 = arith.constant 0 : index
    %103 = vector.load %arg5[%c0_91, %c5, %c0_92, %c0_93] : memref<1x9x2x128xi32, #tpu.memory_space<vmem>>, vector<1x1x2x128xi32>
    %104 = vector.shape_cast %103 : vector<1x1x2x128xi32> to vector<2x128xi32>
    %105 = arith.addi %104, %91 : vector<2x128xi32>
    %c0_94 = arith.constant 0 : index
    %c5_95 = arith.constant 5 : index
    %c0_96 = arith.constant 0 : index
    %c0_97 = arith.constant 0 : index
    %106 = vector.load %arg5[%c0_94, %c5_95, %c0_96, %c0_97] : memref<1x9x2x128xi32, #tpu.memory_space<vmem>>, vector<1x1x2x128xi32>
    %107 = vector.shape_cast %106 : vector<1x1x2x128xi32> to vector<2x128xi32>
    %108 = vector.shape_cast %105 : vector<2x128xi32> to vector<1x1x2x128xi32>
    tpu.vector_store %arg5[%c0_94, %c5_95, %c0_96, %c0_97], %108 {strides = array<i32>} : memref<1x9x2x128xi32, #tpu.memory_space<vmem>>, vector<1x1x2x128xi32>,
    %c0_98 = arith.constant 0 : index
    %c8 = arith.constant 8 : index
    %c0_99 = arith.constant 0 : index
    %c0_100 = arith.constant 0 : index
    %109 = vector.load %arg5[%c0_98, %c8, %c0_99, %c0_100] : memref<1x9x2x128xi32, #tpu.memory_space<vmem>>, vector<1x1x2x128xi32>
    %110 = vector.shape_cast %109 : vector<1x1x2x128xi32> to vector<2x128xi32>
    %111 = arith.addi %110, %94 : vector<2x128xi32>
    %c0_101 = arith.constant 0 : index
    %c8_102 = arith.constant 8 : index
    %c0_103 = arith.constant 0 : index
    %c0_104 = arith.constant 0 : index
    %112 = vector.load %arg5[%c0_101, %c8_102, %c0_103, %c0_104] : memref<1x9x2x128xi32, #tpu.memory_space<vmem>>, vector<1x1x2x128xi32>
    %113 = vector.shape_cast %112 : vector<1x1x2x128xi32> to vector<2x128xi32>
    %114 = vector.shape_cast %111 : vector<2x128xi32> to vector<1x1x2x128xi32>
    tpu.vector_store %arg5[%c0_101, %c8_102, %c0_103, %c0_104], %114 {strides = array<i32>} : memref<1x9x2x128xi32, #tpu.memory_space<vmem>>, vector<1x1x2x128xi32>,
    return
  }
  func.func @transform_0(%arg0: i32, %arg1: i32, %arg2: i32) -> (i32, i32, i32, i32) {
    %c1_i32 = arith.constant 1 : i32
    %0 = arith.muli %arg0, %c1_i32 : i32
    %1 = arith.addi %0, %arg2 : i32
    %c0_i32 = arith.constant 0 : i32
    %c0_i32_0 = arith.constant 0 : i32
    %c0_i32_1 = arith.constant 0 : i32
    return %arg1, %c0_i32, %1, %c0_i32_0 : i32, i32, i32, i32
  }
  func.func @transform_1(%arg0: i32, %arg1: i32, %arg2: i32) -> (i32, i32, i32) {
    %c1_i32 = arith.constant 1 : i32
    %0 = arith.muli %arg0, %c1_i32 : i32
    %1 = arith.addi %0, %arg2 : i32
    %c0_i32 = arith.constant 0 : i32
    %c0_i32_0 = arith.constant 0 : i32
    return %arg1, %1, %c0_i32 : i32, i32, i32
  }
  func.func @transform_2(%arg0: i32, %arg1: i32, %arg2: i32) -> (i32, i32, i32, i32) {
    %c2_i32 = arith.constant 2 : i32
    %0 = arith.muli %arg0, %c2_i32 : i32
    %1 = arith.addi %0, %arg1 : i32
    %c0_i32 = arith.constant 0 : i32
    %c0_i32_0 = arith.constant 0 : i32
    %c0_i32_1 = arith.constant 0 : i32
    %c0_i32_2 = arith.constant 0 : i32
    return %1, %c0_i32, %c0_i32_0, %c0_i32_1 : i32, i32, i32, i32
  }
}

</mosaic_0001>

<bundles_post_ra>
// kernel: tpu_custom_call.1
= control target key start
LH: loop header
LB: loop body
LE: loop exit
PB: predicated region body
PF: predicated region fallthrough
CT: control target
= control target key end

     0   :  { %7 = vsyncpa [#allocation3], 0  ;;  %s901_s0 = inlined_call_operand.hbm [shape: f32[2,4,2,128], index: 0, kind: input, shape index: {}]   ;;  %s902_s1 = inlined_call_operand.hbm [shape: s32[2,2,128], index: 1, kind: input, shape index: {}]   ;;  %s903_s2 = inlined_call_operand.hbm [shape: s32[2,9,2,128], index: 2, kind: output, shape index: {}]  }
   0x1   :  { %9 = vsyncpa [#allocation3 + $0x1], 0 }
   0x2   :  { %10 = vsyncpa [#allocation6], 0 }
   0x3   :  { %12 = vsyncpa [#allocation6 + $0x1], 0 }
   0x4   :  { %13 = vsyncpa [#allocation4], 0 }
   0x5   :  { %15 = vsyncpa [#allocation4 + $0x1], 0  ;;  %s730_s9 = smov 0   ;;  %s732_s10 = smov 0  }
   0x6   :  { %s734_s11 = smov 0   ;;  %s736_s12 = smov 0  }
   0x7   :  { %s738_s13 = smov 0   ;;  %s740_s14 = smov 0  }
   0x8 LB: > { %s453_s15 = sadd.s32 4294967295, %s708_s14   ;;  %s454_s16 = sadd.s32 4294967294, %s708_s14   ;;  %s708_s14 = sphi %s740_s14, %s21_s14   ;;  %s704_s13 = sphi %s738_s13, %s913_s13   ;;  %s700_s12 = sphi %s736_s12, %s912_s12   ;;  %s696_s11 = sphi %s734_s11, %s911_s11   ;;  %s692_s10 = sphi %s732_s10, %s910_s10   ;;  %s688_s9 = sphi %s730_s9, %s909_s9  }
   0x9   : > { %s36_s17 = sadd.s32 1, %s704_s13  ;;  %s51_s18 = sadd.s32 1, %s696_s11 }
   0xa   : > { %p38_p0 = scmp.ge.s32.totalorder %s36_s17, 2  ;;  %p58_p1 = scmp.ne.s32.totalorder %s696_s11, %s692_s10 }
   0xb   : > { %p59_p2 = scmp.eq.s32.totalorder %s708_s14, 0  ;;  %p64_p3 = scmp.ne.s32.totalorder %s692_s10, %s688_s9 }
   0xc   : > { %s915_s17 = smov (%p38_p0, %s36_s17), 0  ;;  %p65_p5 = scmp.eq.s32.totalorder %s453_s15, 0 }
   0xd   : > { %p771_p4 = por %p59_p2, %p58_p1  ;;  %s46_s20 = ssub.s32 %s704_s13, %s915_s17 }
   0xe   : > { %p122_p6 = scmp.eq.s32.totalorder %s453_s15, 1  ;;  %p49_p7 = scmp.eq.s32.totalorder %s46_s20, 0 }
   0xf   : > { %p777_p8 = por %p65_p5, %p64_p3  ;;  %p128_p10 = scmp.eq.s32.totalorder %s454_s16, 1 }
  0x10   : > { %p781_p9 = por %p122_p6, %p58_p1  ;;  %p456_p12 = scmp.ge.s32.totalorder %s708_s14, 2 }
  0x11   : > { %s786_s23 = scalar_select %p49_p7, %s696_s11, %s51_s18  }
  0x12   : > { %p788_p11 = por %p128_p10, %p64_p3  ;;  %p507_p13 = scmp.lt.s32.totalorder %s708_s14, 2 }
  0x13   : > { %s148_s25 = sand.u32 1, %s696_s11   ;;  %s487_s27 = sshll.u32 %s704_s13, 3 }
  0x14   : > { %s457_s26 = sshll.u32 %s148_s25, 3  ;;  %s159_s30 = scalar_lea.hbm %s901_s0, %s487_s27 }
  0x15   : > { %s152_s3 = scalar_lea.vmem [#allocation2], %s457_s26  ;;  %s160_s5 = sshll.u32 %s159_s30, 4  ;;  %s161_s5 = int_to_ptr.hbm [resolvable:$true] %s160_s5 }
  0x16   : > { %s162_s4 = sshll.u32 %s152_s3, 4  ;;  %p801_p0 = pnand %p507_p13, %p771_p4  ;;  %s163_s4 = int_to_ptr.vmem [resolvable:$true] %s162_s4 }
  0x17   : > { %p462_p1 = scmp.ge.s32.totalorder %s708_s14, 1  ;;  %s149_s7 = scalar_lea.sflag [#allocation3], %s148_s25 }
  0x18   : > { %s710_s8 = smov 32   ;;  %s711_s15 = smov 2  }
  0x19   : > { %499 = dma.hbm_to_vmem [thread:$0]  (!%p801_p0), %s161_s5, 128, %s163_s4, %s149_s7, %s710_s8, %s710_s8, %s711_s15  }
  0x1a   : > { %p191_p2 = scmp.lt.s32.totalorder %s708_s14, 3  ;;  %s460_s16 = sshll.u32 %s148_s25, 1 }
  0x1b   : > { %s461_s18 = sshll.u32 %s704_s13, 1  ;;  %s176_s27 = scalar_lea.vmem [#allocation5], %s460_s16 }
  0x1c   : > { %p192_p3 = pnand %p462_p1, %p191_p2  ;;  %s182_s19 = scalar_lea.hbm %s902_s1, %s461_s18 }
  0x1d   : > { %s186_s28 = sshll.u32 %s176_s27, 4  ;;  %s184_s29 = sshll.u32 %s182_s19, 4  ;;  %s187_s28 = int_to_ptr.vmem [resolvable:$true] %s186_s28  ;;  %s185_s29 = int_to_ptr.hbm [resolvable:$true] %s184_s29 }
  0x1e   : > { %s173_s30 = scalar_lea.sflag [#allocation6], %s148_s25  ;;  %195 = sbr.rel (%p192_p3) target bundleno = 64 (0x40), region = 28 }
  0x1f   : > { %502 = dma.hbm_to_vmem [thread:$0]  (!%p801_p0), %s185_s29, 32, %s187_s28, %s173_s30  }
  0x20   : > { %s816_s3 = sand.u32 (!%p192_p3), 1, %s692_s10  }
  0x21   : > { %s463_s4 = sshll.u32 (!%p192_p3), %s816_s3, 3  ;;  %s198_s5 = scalar_lea.sflag (!%p192_p3), [#allocation3], %s816_s3 }
  0x22   : > { %s201_s7 = scalar_lea.vmem (!%p192_p3), [#allocation2], %s463_s4 }
  0x23   : > { %675 = dma.done.wait (%p777_p8), %s198_s5, 128  }
  0x24   : > { %677 = vsyncadd (%p777_p8), %s198_s5, 4294967168  ;;  %s464_s25 = sshll.u32 %s816_s3, 1  ;;  %s208_s6 = scalar_lea.sflag [#allocation6], %s816_s3 }
  0x25   : > { %s211_s8 = scalar_lea.vmem [#allocation5], %s464_s25 }
  0x26   : > { %679 = dma.done.wait (%p777_p8), %s208_s6, 32  }
  0x27   : > { %681 = vsyncadd (%p777_p8), %s208_s6, 4294967264  ;;  %s488_s15 = smul.u32 18, %s816_s3  ;;  %v712_v0 = vmov 0   ;;  %v255_v1 = vld [vmem:[%s201_s7] sm:$0x3]  ;;  %s322_s27 = scalar_lea.sflag [#allocation4], %s816_s3 }
  0x28   : > { %v465_v2 = vld [vmem:[%s201_s7 + $0x2] sm:$0x3]  ;;  %v466_v3 = vld [vmem:[%s201_s7 + $0x4] sm:$0x3]  ;;  %v467_v4 = vld [vmem:[%s201_s7 + $0x6] sm:$0x3] }
  0x29   : > { %s831_s16 = scalar_lea.vmem [#allocation7], %s488_s15  ;;  %vm258_vm0 = vcmp.gt.f32.partialorder %v465_v2, %v255_v1  ;;  %v270_v7 = vld [vmem:[%s211_s8] sm:$0x3]  ;;  %s489_s21 = smul.u32 18, %s700_s12 }
  0x2a   : > { %246 = vst [vmem:[%s831_s16] sm:$0x3] %v712_v0  ;;  %v259_v5 = vsel %vm258_vm0, %v465_v2, %v255_v1  ;;  %v260_v6 = vsel %vm258_vm0, 1, %v712_v0  ;;  %vm271_vm2 = vcmp.eq.s32.totalorder %v270_v7, 1  ;;  %vm287_vm3 = vcmp.eq.s32.totalorder %v270_v7, 2  ;;  %s336_s26 = sshll.u32 %s831_s16, 4  ;;  %s642_s5 = scalar_lea.hbm %s903_s2, 36  ;;  %s337_s26 = int_to_ptr.vmem [resolvable:$true] %s336_s26 }
  0x2b   : > { %247 = vst [vmem:[%s831_s16 + $0x2] sm:$0x3] %v712_v0  ;;  %vm263_vm1 = vcmp.gt.f32.partialorder %v466_v3, %v259_v5  ;;  %v273_v10 = vsel %vm271_vm2, 1, %v712_v0  ;;  %v289_v12 = vsel %vm287_vm3, 1, %v712_v0  ;;  %vm304_vm5 = vcmp.eq.s32.totalorder %v270_v7, 3  ;;  %s335_s20 = scalar_lea.hbm %s903_s2, %s489_s21 }
  0x2c   : > { %248 = vst [vmem:[%s831_s16 + $0x4] sm:$0x3] %v712_v0  ;;  %v264_v8 = vsel %vm263_vm1, %v466_v3, %v259_v5  ;;  %v265_v9 = vsel %vm263_vm1, 2, %v260_v6  ;;  %v306_v16 = vsel %vm304_vm5, 1, %v712_v0  ;;  %s338_s19 = sshll.u32 %s335_s20, 4  ;;  %s339_s19 = int_to_ptr.hbm [resolvable:$true] %s338_s19 }
  0x2d   : > { %249 = vst [vmem:[%s831_s16 + $0x6] sm:$0x3] %v712_v0  ;;  %vm268_vm4 = vcmp.gt.f32.partialorder %v467_v4, %v264_v8  ;;  %s636_s28 = sshra.s32 %s339_s19, 4  ;;  %s637_s28 = int_to_ptr.hbm [resolvable:$true] %s636_s28 }
  0x2e   : > { %250 = vst [vmem:[%s831_s16 + $0x8] sm:$0x3] %v712_v0  ;;  %v269_v14 = vsel %vm268_vm4, 3, %v265_v9  ;;  %s638_s29 = scalar_lea.hbm %s637_s28, 18  ;;  %p643_p7 = scmp.lt.s32.totalorder %s637_s28, %s903_s2 }
  0x2f   : > { %251 = vst [vmem:[%s831_s16 + $0xa] sm:$0x3] %v712_v0  ;;  %vm272_vm6 = vcmp.eq.s32.totalorder %v269_v14, 1  ;;  %vm288_vm7 = vcmp.eq.s32.totalorder %v269_v14, 2  ;;  %vm305_vm8 = vcmp.eq.s32.totalorder %v269_v14, 3  ;;  %p639_p4 = scmp.ne.s32.totalorder %s637_s28, %s638_s29  ;;  %p644_p8 = scmp.lt.s32.totalorder %s642_s5, %s638_s29 }
  0x30   : > { %252 = vst [vmem:[%s831_s16 + $0xc] sm:$0x3] %v712_v0  ;;  %v275_v20 = vsel %vm272_vm6, %v273_v10, 0  ;;  %v274_v21 = vsel %vm272_vm6, 1, %v712_v0  ;;  %v291_v22 = vsel %vm288_vm7, %v289_v12, 0  ;;  %v290_v28 = vsel %vm288_vm7, 1, %v712_v0 }
  0x31   : > { %253 = vst [vmem:[%s831_s16 + $0xe] sm:$0x3] %v712_v0  ;;  %v276_v11 = vld [vmem:[%s831_s16] sm:$0x3]  ;;  %v308_v29 = vsel %vm305_vm8, %v306_v16, 0  ;;  %v307_v32 = vsel %vm305_vm8, 1, %v712_v0  ;;  %p640_p5 = pnand %p639_p4, %p781_p9  ;;  %p645_p10 = por %p644_p8, %p643_p7 }
  0x32   : > { %254 = vst [vmem:[%s831_s16 + $0x10] sm:$0x3] %v712_v0  ;;  %v472_v13 = vld [vmem:[%s831_s16 + $0x2] sm:$0x3]  ;;  %v277_v25 = vadd.s32 %v276_v11, %v275_v20 }
  0x33   : > { %v478_v17 = vld [vmem:[%s831_s16 + $0x4] sm:$0x3]  ;;  %v294_v27 = vadd.s32 %v472_v13, %v291_v22  ;;  %p641_p6 = pneg %p640_p5 }
  0x34   : > { %v468_v15 = vld [vmem:[%s831_s16 + $0x6] sm:$0x3]  ;;  %278 = vst [vmem:[%s831_s16] sm:$0x3] %v277_v25  ;;  %v311_v34 = vadd.s32 %v478_v17, %v308_v29 }
  0x35   : > { %v281_v18 = vadd.s32 %v468_v15, %v273_v10  ;;  %v474_v19 = vld [vmem:[%s831_s16 + $0x8] sm:$0x3]  ;;  %473 = vst [vmem:[%s831_s16 + $0x2] sm:$0x3] %v294_v27  ;;  %p646_p13 = pnand %p645_p10, %p641_p6 }
  0x36   : > { %v298_v23 = vadd.s32 %v474_v19, %v289_v12  ;;  %v480_v24 = vld [vmem:[%s831_s16 + $0xa] sm:$0x3]  ;;  %479 = vst [vmem:[%s831_s16 + $0x4] sm:$0x3] %v311_v34 }
  0x37   : > { %469 = vst [vmem:[%s831_s16 + $0x6] sm:$0x3] %v281_v18  ;;  %v470_v26 = vld [vmem:[%s831_s16 + $0xc] sm:$0x3]  ;;  %v315_v36 = vadd.s32 %v480_v24, %v306_v16 }
  0x38   : > { %v285_v30 = vadd.s32 %v470_v26, %v274_v21  ;;  %475 = vst [vmem:[%s831_s16 + $0x8] sm:$0x3] %v298_v23  ;;  %v476_v31 = vld [vmem:[%s831_s16 + $0xe] sm:$0x3] }
  0x39   : > { %v302_v33 = vadd.s32 %v476_v31, %v290_v28  ;;  %v482_v35 = vld [vmem:[%s831_s16 + $0x10] sm:$0x3]  ;;  %481 = vst [vmem:[%s831_s16 + $0xa] sm:$0x3] %v315_v36 }
  0x3a   : > { %471 = vst [vmem:[%s831_s16 + $0xc] sm:$0x3] %v285_v30  ;;  %v319_v37 = vadd.s32 %v482_v35, %v307_v32 }
  0x3b   : > { %477 = vst [vmem:[%s831_s16 + $0xe] sm:$0x3] %v302_v33 }
  0x3c   : > { %483 = vst [vmem:[%s831_s16 + $0x10] sm:$0x3] %v319_v37 }
  0x3d   : > { %649 = shalt.err (!%p646_p13)
}
  0x3e   : > { %s713_s3 = smov 32   ;;  %s714_s6 = smov 2  }
  0x3f   : > { %494 = dma.vmem_to_hbm [thread:$0]  (%p781_p9), %s337_s26, 288, %s339_s19, %s322_s27, %s713_s3, %s713_s3, %s714_s6  }
  0x40 PF: > { %s353_s8 = sand.u32 1, %s688_s9   ;;  %p504_p0 = pnand %p456_p12, %p788_p11 }
  0x41   : > { %s354_s15 = scalar_lea.sflag [#allocation4], %s353_s8 }
  0x42   : > { %p505_p1 = pneg %p504_p0 }
  0x44   : > { %683 = dma.done.wait (%p505_p1), %s354_s15, 288  }
  0x45   : > { %685 = vsyncadd (%p505_p1), %s354_s15, 4294967008  ;;  %s21_s14 = sadd.s32 1, %s708_s14   ;;  %s909_s9 = smov %s692_s10 }
  0x46   : > { %p18_p2 = scmp.ge.s32.totalorder %s21_s14, 4   ;;  %s910_s10 = smov %s696_s11 }
  0x47   : > { %s911_s11 = smov %s786_s23  ;;  %s912_s12 = smov %s704_s13 }
  0x48   : > { %s913_s13 = smov %s915_s17  ;;  %20 = sbr.rel (!%p18_p2) target bundleno = 8 (0x8), region = 101 }
  0x4d   :  { %360 = vsyncpa [#allocation3], 1 }
  0x4e   :  { %362 = vsyncpa [#allocation3 + $0x1], 1 }
  0x4f   :  { %363 = vsyncpa [#allocation6], 1 }
  0x50   :  { %365 = vsyncpa [#allocation6 + $0x1], 1 }
  0x51   :  { %366 = vsyncpa [#allocation4], 1 }
  0x52   :  { %368 = vsyncpa [#allocation4 + $0x1], 1 }

</bundles_post_ra>
